<compile_context>
chip_gen: v7x
topology: tpu7x:2x2x1
jax: 0.10.0
libtpu: 0.0.40
codegen_flags: <defaults>
</compile_context>

<pallas_src>
import jax
import jax.numpy as jnp
from jax.experimental import pallas as pl
from jax.experimental.pallas import tpu as pltpu


OUT_W = 128  # lane-dense packed output width (u | x | h_new | zero pad)


# ---------------------------------------------------------------------------
# Pallas kernel: full T-step rollout (KalmanNet step + controller per step)
# ---------------------------------------------------------------------------
def recovery_kernel(
    # per-step sequence inputs (blocked over the time grid axis)
    y_ref, ref_ref,
    # initial state (read only at t == 0)
    x0_ref, y0_ref, h0_ref,
    # state-transition / observation matrices (transposed)
    Ft_ref, Ht_ref,
    # KalmanNet feature FC: fused weight for [obs_diff | innov]
    W1_ref, b1_ref,
    # GRU cell: lane-aligned per-gate weights ([z1|h] for r/z, separate for n gate)
    Wr_ref, br_ref, Wz_ref, bz_ref, Win_ref, bin_ref, Whn_ref, bhn_ref,
    # Kalman-gain head + summation matrix (row-major [m, n] flattening)
    W2_ref, b2_ref, S_ref,
    # controller: fused first-layer weight for [x_prior | ref | kg*innov] (S pre-folded)
    Wc1_ref, bc1_ref, Wc2_ref, bc2_ref,
    # packed output
    out_ref,
    # VMEM state carries
    x_s, y_s, h_s,
):
    f32 = jnp.float32
    t = pl.program_id(1)

    @pl.when(t == 0)
    def _init():
        x_s[...] = x0_ref[...]
        y_s[...] = y0_ref[...]
        h_s[...] = h0_ref[...]

    y = y_ref[0]          # [B, n]
    refsig = ref_ref[0]   # [B, m]
    h = h_s[...]          # [B, Hgru]

    # ---- prediction step -------------------------------------------------------
    xprior = jnp.dot(x_s[...], Ft_ref[...], preferred_element_type=f32)   # [B, m]
    y_prior = jnp.dot(xprior, Ht_ref[...], preferred_element_type=f32)    # [B, n]
    innov = y - y_prior
    obs_diff = y - y_s[...]

    # ---- KalmanNet input features: single fused FC -----------------------------
    feat = jnp.concatenate([obs_diff, innov], axis=-1)                    # [B, 2n]
    z1 = jnp.maximum(
        jnp.dot(feat, W1_ref[...], preferred_element_type=f32) + b1_ref[...], 0.0)

    # ---- GRU cell (PyTorch nn.GRUCell semantics), lane-aligned gate results ----
    zh = jnp.concatenate([z1, h], axis=-1)                                # [B, Hfc+Hgru]
    r = jax.nn.sigmoid(jnp.dot(zh, Wr_ref[...], preferred_element_type=f32) + br_ref[...])
    z = jax.nn.sigmoid(jnp.dot(zh, Wz_ref[...], preferred_element_type=f32) + bz_ref[...])
    g_in = jnp.dot(z1, Win_ref[...], preferred_element_type=f32) + bin_ref[...]
    g_hn = jnp.dot(h, Whn_ref[...], preferred_element_type=f32) + bhn_ref[...]
    n_gate = jnp.tanh(g_in + r * g_hn)
    h_new = (1.0 - z) * n_gate + z * h

    # ---- Kalman gain (flat row-major [m, n]) and gain * innovation -------------
    kg = jnp.dot(h_new, W2_ref[...], preferred_element_type=f32) + b2_ref[...]   # [B, m*n]
    m_dim = x_s.shape[-1]
    kgi = kg * jnp.tile(innov, (1, m_dim))                                       # [B, m*n]

    # ---- recovery controller: S folded into Wc1 => single matmul on the u path -
    cin = jnp.concatenate([xprior, refsig, kgi], axis=-1)                        # [B, 2m+m*n]
    c1 = jnp.maximum(
        jnp.dot(cin, Wc1_ref[...], preferred_element_type=f32) + bc1_ref[...], 0.0)
    u = jnp.dot(c1, Wc2_ref[...], preferred_element_type=f32) + bc2_ref[...]

    # ---- posterior state (off the u critical path) + state carry ----------------
    x_post = xprior + jnp.dot(kgi, S_ref[...], preferred_element_type=f32)       # [B, m]
    x_s[...] = x_post
    y_s[...] = y
    h_s[...] = h_new

    # ---- single lane-dense packed store: [u | x | h_new | zero pad] -------------
    bsz = y.shape[0]
    pad = OUT_W - (u.shape[-1] + x_post.shape[-1] + h_new.shape[-1])
    packed = jnp.concatenate([u, x_post, h_new, jnp.zeros((bsz, pad), f32)], axis=-1)
    out_ref[0] = packed


# ---------------------------------------------------------------------------
# Wrapper
# ---------------------------------------------------------------------------
def recovery_network_forward(y_seq, ref_seq, init_state, kp, *, batch_group=8):
    """Run the full T-step rollout. Returns per-step (u_seq, x_seq, h_seq)."""
    T, B, n = y_seq.shape
    x0, y0, h0 = init_state
    m = x0.shape[-1]
    Hgru = h0.shape[-1]
    u_dim = kp["bc2"].shape[-1]

    BG = min(batch_group, B)
    assert B % BG == 0 and BG % 8 == 0
    G = B // BG

    weight_names = [
        "Ft", "Ht", "W1", "b1", "Wr", "br", "Wz", "bz",
        "Win", "bin", "Whn", "bhn", "W2", "b2", "S",
        "Wc1", "bc1", "Wc2", "bc2",
    ]
    weights = [kp[name] for name in weight_names]

    in_specs = (
        [pl.BlockSpec((1, BG, n), lambda g, t: (t, g, 0)),     # y_seq
         pl.BlockSpec((1, BG, m), lambda g, t: (t, g, 0)),     # ref_seq
         pl.BlockSpec((BG, m), lambda g, t: (g, 0)),           # x0
         pl.BlockSpec((BG, n), lambda g, t: (g, 0)),           # y0
         pl.BlockSpec((BG, Hgru), lambda g, t: (g, 0))]        # h0
        # weights: constant block index => DMA'd once, stay resident in VMEM
        + [pl.BlockSpec(w.shape, lambda g, t: (0, 0)) for w in weights]
    )
    out_spec = pl.BlockSpec((1, BG, OUT_W), lambda g, t: (t, g, 0))

    # rough cost estimate (advisory only)
    matmul_kn = [
        (m, m), (m, n), (2 * n, kp["W1"].shape[1]),
        (kp["Wr"].shape[0], Hgru), (kp["Wz"].shape[0], Hgru),
        (kp["Win"].shape[0], Hgru), (Hgru, Hgru),
        (Hgru, m * n), (m * n, m),
        (kp["Wc1"].shape[0], kp["Wc1"].shape[1]),
        (kp["Wc1"].shape[1], u_dim),
    ]
    flops = int(2 * B * T * sum(k * c for k, c in matmul_kn))
    transcendentals = int(3 * B * T * Hgru)
    bytes_accessed = int(4 * (y_seq.size + ref_seq.size + x0.size + y0.size + h0.size
                              + sum(int(w.size) for w in weights) + T * B * OUT_W))

    grid_spec = pltpu.PrefetchScalarGridSpec(
        num_scalar_prefetch=0,
        grid=(G, T),
        in_specs=in_specs,
        out_specs=out_spec,
        scratch_shapes=[
            pltpu.VMEM((BG, m), jnp.float32),      # x posterior carry
            pltpu.VMEM((BG, n), jnp.float32),      # previous measurement carry
            pltpu.VMEM((BG, Hgru), jnp.float32),   # GRU hidden carry
        ],
    )

    out = pl.pallas_call(
        recovery_kernel,
        out_shape=jax.ShapeDtypeStruct((T, B, OUT_W), jnp.float32),
        grid_spec=grid_spec,
        compiler_params=pltpu.CompilerParams(
            dimension_semantics=("parallel", "arbitrary")),
        cost_estimate=pl.CostEstimate(
            flops=flops, transcendentals=transcendentals,
            bytes_accessed=bytes_accessed),
    )(y_seq, ref_seq, x0, y0, h0, *weights)

    u_seq = out[..., :u_dim]
    x_seq = out[..., u_dim:u_dim + m]
    h_seq = out[..., u_dim + m:u_dim + m + Hgru]
    return u_seq, x_seq, h_seq


# ---------------------------------------------------------------------------
# Parameter construction: "natural" (PyTorch-layout, transposed) params and the
# fused/pre-folded kernel params derived from them.
# ---------------------------------------------------------------------------
def make_natural_params(key, m, n, Hfc, Hgru, Hc, u_dim):
    ks = jax.random.split(key, 14)
    g = lambda k, shape: (0.1 * jax.random.normal(k, shape)).astype(jnp.float32)
    return {
        "Ft": jnp.eye(m, dtype=jnp.float32),        # state transition F^T
        "Ht": jnp.eye(m, n, dtype=jnp.float32),     # observation matrix H^T
        "W1a_T": g(ks[0], (n, Hfc)),
        "W1b_T": g(ks[1], (n, Hfc)),
        "b1": g(ks[2], (1, Hfc)),
        "Wih_T": g(ks[3], (Hfc, 3 * Hgru)),
        "Whh_T": g(ks[4], (Hgru, 3 * Hgru)),
        "bih": g(ks[5], (1, 3 * Hgru)),
        "bhh": g(ks[6], (1, 3 * Hgru)),
        "W2_T": g(ks[7], (Hgru, m * n)),
        "b2": g(ks[8], (1, m * n)),
        "Wc1x_T": g(ks[9], (m, Hc)),
        "Wc1r_T": g(ks[10], (m, Hc)),
        "bc1": g(ks[11], (1, Hc)),
        "Wc2_T": g(ks[12], (Hc, u_dim)),
        "bc2": g(ks[13], (1, u_dim)),
    }


def pack_kernel_params(nat, m, n, Hgru):
    H = Hgru
    Wih, Whh = nat["Wih_T"], nat["Whh_T"]
    bih, bhh = nat["bih"], nat["bhh"]
    # Summation matrix S[j*n + i, j] = 1 implementing xd = einsum("bmn,bn->bm", KG, innov)
    rows = jnp.arange(m * n)
    S = jnp.zeros((m * n, m), jnp.float32).at[rows, rows // n].set(1.0)
    return {
        "Ft": nat["Ft"],
        "Ht": nat["Ht"],
        # fused FC1 for [obs_diff | innov]
        "W1": jnp.concatenate([nat["W1a_T"], nat["W1b_T"]], axis=0),
        "b1": nat["b1"],
        # per-gate, lane-aligned GRU weights; r/z gates consume [z1 | h]
        "Wr": jnp.concatenate([Wih[:, :H], Whh[:, :H]], axis=0),
        "br": bih[:, :H] + bhh[:, :H],
        "Wz": jnp.concatenate([Wih[:, H:2 * H], Whh[:, H:2 * H]], axis=0),
        "bz": bih[:, H:2 * H] + bhh[:, H:2 * H],
        "Win": Wih[:, 2 * H:],
        "bin": bih[:, 2 * H:],
        "Whn": Whh[:, 2 * H:],
        "bhn": bhh[:, 2 * H:],
        "W2": nat["W2_T"],
        "b2": nat["b2"],
        "S": S,
        # controller first layer for [x_prior | ref | kg*innov]; S folded into the x-part
        "Wc1": jnp.concatenate([nat["Wc1x_T"], nat["Wc1r_T"], S @ nat["Wc1x_T"]], axis=0),
        "bc1": nat["bc1"],
        "Wc2": nat["Wc2_T"],
        "bc2": nat["bc2"],
    }


# ---------------------------------------------------------------------------
# Pure-JAX reference (unfused natural formulation) for verification
# ---------------------------------------------------------------------------
def reference_forward(y_seq, ref_seq, init_state, nat):
    H = init_state[2].shape[-1]
    m = init_state[0].shape[-1]

    def step(carry, inp):
        x_prev, y_prev, h = carry
        y, refsig = inp
        xprior = x_prev @ nat["Ft"]
        innov = y - xprior @ nat["Ht"]
        obs_diff = y - y_prev
        z1 = jax.nn.relu(obs_diff @ nat["W1a_T"] + innov @ nat["W1b_T"] + nat["b1"])
        gi = z1 @ nat["Wih_T"] + nat["bih"]
        gh = h @ nat["Whh_T"] + nat["bhh"]
        r = jax.nn.sigmoid(gi[:, :H] + gh[:, :H])
        z = jax.nn.sigmoid(gi[:, H:2 * H] + gh[:, H:2 * H])
        ng = jnp.tanh(gi[:, 2 * H:] + r * gh[:, 2 * H:])
        h_new = (1.0 - z) * ng + z * h
        kg = h_new @ nat["W2_T"] + nat["b2"]
        KG = kg.reshape(kg.shape[0], m, -1)
        x = xprior + jnp.einsum("bmn,bn->bm", KG, innov)
        c1 = jax.nn.relu(x @ nat["Wc1x_T"] + refsig @ nat["Wc1r_T"] + nat["bc1"])
        u = c1 @ nat["Wc2_T"] + nat["bc2"]
        return (x, y, h_new), (u, x, h_new)

    _, (u_seq, x_seq, h_seq) = jax.lax.scan(step, init_state, (y_seq, ref_seq))
    return u_seq, x_seq, h_seq


if __name__ == "__main__":
    T, B = 8, 16                 # time steps, batch (2 batch groups of 8 -> parallel grid axis)
    m = n_obs = 4                # state dim, observation dim
    Hfc = Hgru = Hc = 32
    u_dim = 4

    key = jax.random.PRNGKey(0)
    k_y, k_r, k_p = jax.random.split(key, 3)
    y_seq = jax.random.normal(k_y, (T, B, n_obs), jnp.float32)
    ref_seq = jax.random.normal(k_r, (T, B, m), jnp.float32)

    nat = make_natural_params(k_p, m, n_obs, Hfc, Hgru, Hc, u_dim)
    kp = pack_kernel_params(nat, m, n_obs, Hgru)

    # init_hidden_KNet / InitSequence(M1_0, T): zero hidden state and zero priors.
    init_state = (
        jnp.zeros((B, m), jnp.float32),      # M1_0 (posterior at t = -1)
        jnp.zeros((B, n_obs), jnp.float32),  # previous measurement
        jnp.zeros((B, Hgru), jnp.float32),   # GRU hidden
    )

    u_seq, x_seq, h_seq = recovery_network_forward(
        y_seq, ref_seq, init_state, kp, batch_group=8)
    jax.block_until_ready((u_seq, x_seq, h_seq))

    u_ref, x_ref, h_ref = reference_forward(y_seq, ref_seq, init_state, nat)
    assert jnp.allclose(u_seq, u_ref, atol=1e-4, rtol=1e-4), float(jnp.max(jnp.abs(u_seq - u_ref)))
    assert jnp.allclose(x_seq, x_ref, atol=1e-4, rtol=1e-4), float(jnp.max(jnp.abs(x_seq - x_ref)))
    assert jnp.allclose(h_seq, h_ref, atol=1e-4, rtol=1e-4), float(jnp.max(jnp.abs(h_seq - h_ref)))

    # TODO(synk): exact KalmanNetNN / RecoveryController definitions were not provided with the
    # wrapper; this implements the canonical single-step KalmanNet (FC -> GRU -> Kalman gain ->
    # posterior update) plus a 2-layer MLP feedback controller, unrolled over T inside the kernel.
    print("KERNEL_OK")
</pallas_src>

<mosaic_0001>
module attributes {stable_mosaic.version = 11 : i64} {
  func.func @recovery_kernel(%arg0: i32, %arg1: i32, %arg2: memref<1x8x4xf32, #tpu.memory_space<vmem>>, %arg3: memref<1x8x4xf32, #tpu.memory_space<vmem>>, %arg4: memref<8x4xf32, #tpu.memory_space<vmem>>, %arg5: memref<8x4xf32, #tpu.memory_space<vmem>>, %arg6: memref<8x32xf32, #tpu.memory_space<vmem>>, %arg7: memref<4x4xf32, #tpu.memory_space<vmem>>, %arg8: memref<4x4xf32, #tpu.memory_space<vmem>>, %arg9: memref<8x32xf32, #tpu.memory_space<vmem>>, %arg10: memref<1x32xf32, #tpu.memory_space<vmem>>, %arg11: memref<64x32xf32, #tpu.memory_space<vmem>>, %arg12: memref<1x32xf32, #tpu.memory_space<vmem>>, %arg13: memref<64x32xf32, #tpu.memory_space<vmem>>, %arg14: memref<1x32xf32, #tpu.memory_space<vmem>>, %arg15: memref<32x32xf32, #tpu.memory_space<vmem>>, %arg16: memref<1x32xf32, #tpu.memory_space<vmem>>, %arg17: memref<32x32xf32, #tpu.memory_space<vmem>>, %arg18: memref<1x32xf32, #tpu.memory_space<vmem>>, %arg19: memref<32x16xf32, #tpu.memory_space<vmem>>, %arg20: memref<1x16xf32, #tpu.memory_space<vmem>>, %arg21: memref<16x4xf32, #tpu.memory_space<vmem>>, %arg22: memref<24x32xf32, #tpu.memory_space<vmem>>, %arg23: memref<1x32xf32, #tpu.memory_space<vmem>>, %arg24: memref<32x4xf32, #tpu.memory_space<vmem>>, %arg25: memref<1x4xf32, #tpu.memory_space<vmem>>, %arg26: memref<1x8x128xf32, #tpu.memory_space<vmem>>, %arg27: memref<8x4xf32, #tpu.memory_space<vmem>>, %arg28: memref<8x4xf32, #tpu.memory_space<vmem>>, %arg29: memref<8x32xf32, #tpu.memory_space<vmem>>) attributes {dimension_semantics = [#tpu.dimension_semantics<parallel>, #tpu.dimension_semantics<arbitrary>], iteration_bounds = array<i64: 2, 8>, scalar_prefetch = 0 : i64, scratch_operands = 3 : i64, tpu.core_type = #tpu.core_type<tc>, window_params = [{transform_indices = @transform_0, window_bounds = array<i64: 1, 8, 4>}, {transform_indices = @transform_1, window_bounds = array<i64: 1, 8, 4>}, {transform_indices = @transform_2, window_bounds = array<i64: 8, 4>}, {transform_indices = @transform_3, window_bounds = array<i64: 8, 4>}, {transform_indices = @transform_4, window_bounds = array<i64: 8, 32>}, {pipeline_mode = #tpu.pipeline_mode<synchronous>, transform_indices = @transform_5, window_bounds = array<i64: 4, 4>}, {pipeline_mode = #tpu.pipeline_mode<synchronous>, transform_indices = @transform_6, window_bounds = array<i64: 4, 4>}, {pipeline_mode = #tpu.pipeline_mode<synchronous>, transform_indices = @transform_7, window_bounds = array<i64: 8, 32>}, {pipeline_mode = #tpu.pipeline_mode<synchronous>, transform_indices = @transform_8, window_bounds = array<i64: 1, 32>}, {pipeline_mode = #tpu.pipeline_mode<synchronous>, transform_indices = @transform_9, window_bounds = array<i64: 64, 32>}, {pipeline_mode = #tpu.pipeline_mode<synchronous>, transform_indices = @transform_10, window_bounds = array<i64: 1, 32>}, {pipeline_mode = #tpu.pipeline_mode<synchronous>, transform_indices = @transform_11, window_bounds = array<i64: 64, 32>}, {pipeline_mode = #tpu.pipeline_mode<synchronous>, transform_indices = @transform_12, window_bounds = array<i64: 1, 32>}, {pipeline_mode = #tpu.pipeline_mode<synchronous>, transform_indices = @transform_13, window_bounds = array<i64: 32, 32>}, {pipeline_mode = #tpu.pipeline_mode<synchronous>, transform_indices = @transform_14, window_bounds = array<i64: 1, 32>}, {pipeline_mode = #tpu.pipeline_mode<synchronous>, transform_indices = @transform_15, window_bounds = array<i64: 32, 32>}, {pipeline_mode = #tpu.pipeline_mode<synchronous>, transform_indices = @transform_16, window_bounds = array<i64: 1, 32>}, {pipeline_mode = #tpu.pipeline_mode<synchronous>, transform_indices = @transform_17, window_bounds = array<i64: 32, 16>}, {pipeline_mode = #tpu.pipeline_mode<synchronous>, transform_indices = @transform_18, window_bounds = array<i64: 1, 16>}, {pipeline_mode = #tpu.pipeline_mode<synchronous>, transform_indices = @transform_19, window_bounds = array<i64: 16, 4>}, {pipeline_mode = #tpu.pipeline_mode<synchronous>, transform_indices = @transform_20, window_bounds = array<i64: 24, 32>}, {pipeline_mode = #tpu.pipeline_mode<synchronous>, transform_indices = @transform_21, window_bounds = array<i64: 1, 32>}, {pipeline_mode = #tpu.pipeline_mode<synchronous>, transform_indices = @transform_22, window_bounds = array<i64: 32, 4>}, {pipeline_mode = #tpu.pipeline_mode<synchronous>, transform_indices = @transform_23, window_bounds = array<i64: 1, 4>}, {transform_indices = @transform_24, window_bounds = array<i64: 1, 8, 128>}]} {
    %c0_i32 = arith.constant 0 : i32
    %0 = arith.cmpi eq, %arg1, %c0_i32 : i32
    %1 = arith.extui %0 : i1 to i32
    %c0_i32_0 = arith.constant 0 : i32
    %2 = arith.cmpi ne, %1, %c0_i32_0 : i32
    scf.if %2 {
      %c0_75 = arith.constant 0 : index
      %c0_76 = arith.constant 0 : index
      %94 = vector.load %arg4[%c0_75, %c0_76] : memref<8x4xf32, #tpu.memory_space<vmem>>, vector<8x4xf32>
      %c0_77 = arith.constant 0 : index
      %c0_78 = arith.constant 0 : index
      %95 = vector.load %arg27[%c0_77, %c0_78] : memref<8x4xf32, #tpu.memory_space<vmem>>, vector<8x4xf32>
      tpu.vector_store %arg27[%c0_77, %c0_78], %94 {strides = array<i32>} : memref<8x4xf32, #tpu.memory_space<vmem>>, vector<8x4xf32>,
      %c0_79 = arith.constant 0 : index
      %c0_80 = arith.constant 0 : index
      %96 = vector.load %arg5[%c0_79, %c0_80] : memref<8x4xf32, #tpu.memory_space<vmem>>, vector<8x4xf32>
      %c0_81 = arith.constant 0 : index
      %c0_82 = arith.constant 0 : index
      %97 = vector.load %arg28[%c0_81, %c0_82] : memref<8x4xf32, #tpu.memory_space<vmem>>, vector<8x4xf32>
      tpu.vector_store %arg28[%c0_81, %c0_82], %96 {strides = array<i32>} : memref<8x4xf32, #tpu.memory_space<vmem>>, vector<8x4xf32>,
      %c0_83 = arith.constant 0 : index
      %c0_84 = arith.constant 0 : index
      %98 = vector.load %arg6[%c0_83, %c0_84] : memref<8x32xf32, #tpu.memory_space<vmem>>, vector<8x32xf32>
      %c0_85 = arith.constant 0 : index
      %c0_86 = arith.constant 0 : index
      %99 = vector.load %arg29[%c0_85, %c0_86] : memref<8x32xf32, #tpu.memory_space<vmem>>, vector<8x32xf32>
      tpu.vector_store %arg29[%c0_85, %c0_86], %98 {strides = array<i32>} : memref<8x32xf32, #tpu.memory_space<vmem>>, vector<8x32xf32>,
    } else {
    }
    %c0 = arith.constant 0 : index
    %c0_1 = arith.constant 0 : index
    %c0_2 = arith.constant 0 : index
    %3 = vector.load %arg2[%c0, %c0_1, %c0_2] : memref<1x8x4xf32, #tpu.memory_space<vmem>>, vector<1x8x4xf32>
    %4 = vector.shape_cast %3 : vector<1x8x4xf32> to vector<8x4xf32>
    %c0_3 = arith.constant 0 : index
    %c0_4 = arith.constant 0 : index
    %c0_5 = arith.constant 0 : index
    %5 = vector.load %arg3[%c0_3, %c0_4, %c0_5] : memref<1x8x4xf32, #tpu.memory_space<vmem>>, vector<1x8x4xf32>
    %6 = vector.shape_cast %5 : vector<1x8x4xf32> to vector<8x4xf32>
    %c0_6 = arith.constant 0 : index
    %c0_7 = arith.constant 0 : index
    %7 = vector.load %arg29[%c0_6, %c0_7] : memref<8x32xf32, #tpu.memory_space<vmem>>, vector<8x32xf32>
    %c0_8 = arith.constant 0 : index
    %c0_9 = arith.constant 0 : index
    %8 = vector.load %arg27[%c0_8, %c0_9] : memref<8x4xf32, #tpu.memory_space<vmem>>, vector<8x4xf32>
    %c0_10 = arith.constant 0 : index
    %c0_11 = arith.constant 0 : index
    %9 = vector.load %arg7[%c0_10, %c0_11] : memref<4x4xf32, #tpu.memory_space<vmem>>, vector<4x4xf32>
    %cst = arith.constant dense<0.000000e+00> : vector<8x4xf32>
    %10 = tpu.matmul %8, %9, %cst {dimension_numbers = #tpu.dot_dimension_numbers<[1], [0], [0], [1], [0, 0, 1, 1], [], []>} : vector<8x4xf32>, vector<4x4xf32>, vector<8x4xf32> -> vector<8x4xf32>
    %c0_12 = arith.constant 0 : index
    %c0_13 = arith.constant 0 : index
    %11 = vector.load %arg8[%c0_12, %c0_13] : memref<4x4xf32, #tpu.memory_space<vmem>>, vector<4x4xf32>
    %cst_14 = arith.constant dense<0.000000e+00> : vector<8x4xf32>
    %12 = tpu.matmul %10, %11, %cst_14 {dimension_numbers = #tpu.dot_dimension_numbers<[1], [0], [0], [1], [0, 0, 1, 1], [], []>} : vector<8x4xf32>, vector<4x4xf32>, vector<8x4xf32> -> vector<8x4xf32>
    %13 = arith.subf %4, %12 : vector<8x4xf32>
    %c0_15 = arith.constant 0 : index
    %c0_16 = arith.constant 0 : index
    %14 = vector.load %arg28[%c0_15, %c0_16] : memref<8x4xf32, #tpu.memory_space<vmem>>, vector<8x4xf32>
    %15 = arith.subf %4, %14 : vector<8x4xf32>
    %16 = tpu.concatenate %15, %13 in 1 : vector<8x4xf32>, vector<8x4xf32> -> vector<8x8xf32>
    %c0_17 = arith.constant 0 : index
    %c0_18 = arith.constant 0 : index
    %17 = vector.load %arg9[%c0_17, %c0_18] : memref<8x32xf32, #tpu.memory_space<vmem>>, vector<8x32xf32>
    %cst_19 = arith.constant dense<0.000000e+00> : vector<8x32xf32>
    %18 = tpu.matmul %16, %17, %cst_19 {dimension_numbers = #tpu.dot_dimension_numbers<[1], [0], [0], [1], [0, 0, 1, 1], [], []>} : vector<8x8xf32>, vector<8x32xf32>, vector<8x32xf32> -> vector<8x32xf32>
    %c0_20 = arith.constant 0 : index
    %c0_21 = arith.constant 0 : index
    %19 = vector.load %arg10[%c0_20, %c0_21] : memref<1x32xf32, #tpu.memory_space<vmem>>, vector<1x32xf32>
    %20 = vector.broadcast %19 : vector<1x32xf32> to vector<8x32xf32>
    %21 = arith.addf %18, %20 : vector<8x32xf32>
    %cst_22 = arith.constant 0.000000e+00 : f32
    %22 = vector.broadcast %cst_22 : f32 to vector<8x32xf32>
    %23 = arith.maximumf %21, %22 : vector<8x32xf32>
    %24 = tpu.concatenate %23, %7 in 1 : vector<8x32xf32>, vector<8x32xf32> -> vector<8x64xf32>
    %c0_23 = arith.constant 0 : index
    %c0_24 = arith.constant 0 : index
    %25 = vector.load %arg11[%c0_23, %c0_24] : memref<64x32xf32, #tpu.memory_space<vmem>>, vector<64x32xf32>
    %cst_25 = arith.constant dense<0.000000e+00> : vector<8x32xf32>
    %26 = tpu.matmul %24, %25, %cst_25 {dimension_numbers = #tpu.dot_dimension_numbers<[1], [0], [0], [1], [0, 0, 1, 1], [], []>} : vector<8x64xf32>, vector<64x32xf32>, vector<8x32xf32> -> vector<8x32xf32>
    %c0_26 = arith.constant 0 : index
    %c0_27 = arith.constant 0 : index
    %27 = vector.load %arg12[%c0_26, %c0_27] : memref<1x32xf32, #tpu.memory_space<vmem>>, vector<1x32xf32>
    %28 = vector.broadcast %27 : vector<1x32xf32> to vector<8x32xf32>
    %29 = arith.addf %26, %28 : vector<8x32xf32>
    %30 = arith.negf %29 : vector<8x32xf32>
    %31 = math.exp %30 : vector<8x32xf32>
    %cst_28 = arith.constant 1.000000e+00 : f32
    %32 = vector.broadcast %cst_28 : f32 to vector<8x32xf32>
    %33 = arith.addf %32, %31 : vector<8x32xf32>
    %34 = arith.divf %32, %33 : vector<8x32xf32>
    %c0_29 = arith.constant 0 : index
    %c0_30 = arith.constant 0 : index
    %35 = vector.load %arg13[%c0_29, %c0_30] : memref<64x32xf32, #tpu.memory_space<vmem>>, vector<64x32xf32>
    %cst_31 = arith.constant dense<0.000000e+00> : vector<8x32xf32>
    %36 = tpu.matmul %24, %35, %cst_31 {dimension_numbers = #tpu.dot_dimension_numbers<[1], [0], [0], [1], [0, 0, 1, 1], [], []>} : vector<8x64xf32>, vector<64x32xf32>, vector<8x32xf32> -> vector<8x32xf32>
    %c0_32 = arith.constant 0 : index
    %c0_33 = arith.constant 0 : index
    %37 = vector.load %arg14[%c0_32, %c0_33] : memref<1x32xf32, #tpu.memory_space<vmem>>, vector<1x32xf32>
    %38 = vector.broadcast %37 : vector<1x32xf32> to vector<8x32xf32>
    %39 = arith.addf %36, %38 : vector<8x32xf32>
    %40 = arith.negf %39 : vector<8x32xf32>
    %41 = math.exp %40 : vector<8x32xf32>
    %cst_34 = arith.constant 1.000000e+00 : f32
    %42 = vector.broadcast %cst_34 : f32 to vector<8x32xf32>
    %43 = arith.addf %42, %41 : vector<8x32xf32>
    %44 = arith.divf %42, %43 : vector<8x32xf32>
    %c0_35 = arith.constant 0 : index
    %c0_36 = arith.constant 0 : index
    %45 = vector.load %arg15[%c0_35, %c0_36] : memref<32x32xf32, #tpu.memory_space<vmem>>, vector<32x32xf32>
    %cst_37 = arith.constant dense<0.000000e+00> : vector<8x32xf32>
    %46 = tpu.matmul %23, %45, %cst_37 {dimension_numbers = #tpu.dot_dimension_numbers<[1], [0], [0], [1], [0, 0, 1, 1], [], []>} : vector<8x32xf32>, vector<32x32xf32>, vector<8x32xf32> -> vector<8x32xf32>
    %c0_38 = arith.constant 0 : index
    %c0_39 = arith.constant 0 : index
    %47 = vector.load %arg16[%c0_38, %c0_39] : memref<1x32xf32, #tpu.memory_space<vmem>>, vector<1x32xf32>
    %48 = vector.broadcast %47 : vector<1x32xf32> to vector<8x32xf32>
    %49 = arith.addf %46, %48 : vector<8x32xf32>
    %c0_40 = arith.constant 0 : index
    %c0_41 = arith.constant 0 : index
    %50 = vector.load %arg17[%c0_40, %c0_41] : memref<32x32xf32, #tpu.memory_space<vmem>>, vector<32x32xf32>
    %cst_42 = arith.constant dense<0.000000e+00> : vector<8x32xf32>
    %51 = tpu.matmul %7, %50, %cst_42 {dimension_numbers = #tpu.dot_dimension_numbers<[1], [0], [0], [1], [0, 0, 1, 1], [], []>} : vector<8x32xf32>, vector<32x32xf32>, vector<8x32xf32> -> vector<8x32xf32>
    %c0_43 = arith.constant 0 : index
    %c0_44 = arith.constant 0 : index
    %52 = vector.load %arg18[%c0_43, %c0_44] : memref<1x32xf32, #tpu.memory_space<vmem>>, vector<1x32xf32>
    %53 = vector.broadcast %52 : vector<1x32xf32> to vector<8x32xf32>
    %54 = arith.addf %51, %53 : vector<8x32xf32>
    %55 = arith.mulf %34, %54 : vector<8x32xf32>
    %56 = arith.addf %49, %55 : vector<8x32xf32>
    %57 = math.tanh %56 : vector<8x32xf32>
    %cst_45 = arith.constant 1.000000e+00 : f32
    %58 = vector.broadcast %cst_45 : f32 to vector<8x32xf32>
    %59 = arith.subf %58, %44 : vector<8x32xf32>
    %60 = arith.mulf %59, %57 : vector<8x32xf32>
    %61 = arith.mulf %44, %7 : vector<8x32xf32>
    %62 = arith.addf %60, %61 : vector<8x32xf32>
    %c0_46 = arith.constant 0 : index
    %c0_47 = arith.constant 0 : index
    %63 = vector.load %arg19[%c0_46, %c0_47] : memref<32x16xf32, #tpu.memory_space<vmem>>, vector<32x16xf32>
    %cst_48 = arith.constant dense<0.000000e+00> : vector<8x16xf32>
    %64 = tpu.matmul %62, %63, %cst_48 {dimension_numbers = #tpu.dot_dimension_numbers<[1], [0], [0], [1], [0, 0, 1, 1], [], []>} : vector<8x32xf32>, vector<32x16xf32>, vector<8x16xf32> -> vector<8x16xf32>
    %c0_49 = arith.constant 0 : index
    %c0_50 = arith.constant 0 : index
    %65 = vector.load %arg20[%c0_49, %c0_50] : memref<1x16xf32, #tpu.memory_space<vmem>>, vector<1x16xf32>
    %66 = vector.broadcast %65 : vector<1x16xf32> to vector<8x16xf32>
    %67 = arith.addf %64, %66 : vector<8x16xf32>
    %68 = tpu.concatenate %13, %13, %13, %13 in 1 : vector<8x4xf32>, vector<8x4xf32>, vector<8x4xf32>, vector<8x4xf32> -> vector<8x16xf32>
    %69 = arith.mulf %67, %68 : vector<8x16xf32>
    %70 = tpu.concatenate %10, %6, %69 in 1 : vector<8x4xf32>, vector<8x4xf32>, vector<8x16xf32> -> vector<8x24xf32>
    %c0_51 = arith.constant 0 : index
    %c0_52 = arith.constant 0 : index
    %71 = vector.load %arg22[%c0_51, %c0_52] : memref<24x32xf32, #tpu.memory_space<vmem>>, vector<24x32xf32>
    %cst_53 = arith.constant dense<0.000000e+00> : vector<8x32xf32>
    %72 = tpu.matmul %70, %71, %cst_53 {dimension_numbers = #tpu.dot_dimension_numbers<[1], [0], [0], [1], [0, 0, 1, 1], [], []>} : vector<8x24xf32>, vector<24x32xf32>, vector<8x32xf32> -> vector<8x32xf32>
    %c0_54 = arith.constant 0 : index
    %c0_55 = arith.constant 0 : index
    %73 = vector.load %arg23[%c0_54, %c0_55] : memref<1x32xf32, #tpu.memory_space<vmem>>, vector<1x32xf32>
    %74 = vector.broadcast %73 : vector<1x32xf32> to vector<8x32xf32>
    %75 = arith.addf %72, %74 : vector<8x32xf32>
    %cst_56 = arith.constant 0.000000e+00 : f32
    %76 = vector.broadcast %cst_56 : f32 to vector<8x32xf32>
    %77 = arith.maximumf %75, %76 : vector<8x32xf32>
    %c0_57 = arith.constant 0 : index
    %c0_58 = arith.constant 0 : index
    %78 = vector.load %arg24[%c0_57, %c0_58] : memref<32x4xf32, #tpu.memory_space<vmem>>, vector<32x4xf32>
    %cst_59 = arith.constant dense<0.000000e+00> : vector<8x4xf32>
    %79 = tpu.matmul %77, %78, %cst_59 {dimension_numbers = #tpu.dot_dimension_numbers<[1], [0], [0], [1], [0, 0, 1, 1], [], []>} : vector<8x32xf32>, vector<32x4xf32>, vector<8x4xf32> -> vector<8x4xf32>
    %c0_60 = arith.constant 0 : index
    %c0_61 = arith.constant 0 : index
    %80 = vector.load %arg25[%c0_60, %c0_61] : memref<1x4xf32, #tpu.memory_space<vmem>>, vector<1x4xf32>
    %81 = vector.broadcast %80 : vector<1x4xf32> to vector<8x4xf32>
    %82 = arith.addf %79, %81 : vector<8x4xf32>
    %c0_62 = arith.constant 0 : index
    %c0_63 = arith.constant 0 : index
    %83 = vector.load %arg21[%c0_62, %c0_63] : memref<16x4xf32, #tpu.memory_space<vmem>>, vector<16x4xf32>
    %cst_64 = arith.constant dense<0.000000e+00> : vector<8x4xf32>
    %84 = tpu.matmul %69, %83, %cst_64 {dimension_numbers = #tpu.dot_dimension_numbers<[1], [0], [0], [1], [0, 0, 1, 1], [], []>} : vector<8x16xf32>, vector<16x4xf32>, vector<8x4xf32> -> vector<8x4xf32>
    %85 = arith.addf %10, %84 : vector<8x4xf32>
    %c0_65 = arith.constant 0 : index
    %c0_66 = arith.constant 0 : index
    %86 = vector.load %arg27[%c0_65, %c0_66] : memref<8x4xf32, #tpu.memory_space<vmem>>, vector<8x4xf32>
    tpu.vector_store %arg27[%c0_65, %c0_66], %85 {strides = array<i32>} : memref<8x4xf32, #tpu.memory_space<vmem>>, vector<8x4xf32>,
    %c0_67 = arith.constant 0 : index
    %c0_68 = arith.constant 0 : index
    %87 = vector.load %arg28[%c0_67, %c0_68] : memref<8x4xf32, #tpu.memory_space<vmem>>, vector<8x4xf32>
    tpu.vector_store %arg28[%c0_67, %c0_68], %4 {strides = array<i32>} : memref<8x4xf32, #tpu.memory_space<vmem>>, vector<8x4xf32>,
    %c0_69 = arith.constant 0 : index
    %c0_70 = arith.constant 0 : index
    %88 = vector.load %arg29[%c0_69, %c0_70] : memref<8x32xf32, #tpu.memory_space<vmem>>, vector<8x32xf32>
    tpu.vector_store %arg29[%c0_69, %c0_70], %62 {strides = array<i32>} : memref<8x32xf32, #tpu.memory_space<vmem>>, vector<8x32xf32>,
    %cst_71 = arith.constant 0.000000e+00 : f32
    %89 = vector.broadcast %cst_71 : f32 to vector<8x88xf32>
    %90 = tpu.concatenate %82, %85, %62, %89 in 1 : vector<8x4xf32>, vector<8x4xf32>, vector<8x32xf32>, vector<8x88xf32> -> vector<8x128xf32>
    %c0_72 = arith.constant 0 : index
    %c0_73 = arith.constant 0 : index
    %c0_74 = arith.constant 0 : index
    %91 = vector.load %arg26[%c0_72, %c0_73, %c0_74] : memref<1x8x128xf32, #tpu.memory_space<vmem>>, vector<1x8x128xf32>
    %92 = vector.shape_cast %91 : vector<1x8x128xf32> to vector<8x128xf32>
    %93 = vector.shape_cast %90 : vector<8x128xf32> to vector<1x8x128xf32>
    tpu.vector_store %arg26[%c0_72, %c0_73, %c0_74], %93 {strides = array<i32>} : memref<1x8x128xf32, #tpu.memory_space<vmem>>, vector<1x8x128xf32>,
    return
  }
  func.func @transform_0(%arg0: i32, %arg1: i32) -> (i32, i32, i32) {
    %c0_i32 = arith.constant 0 : i32
    %c0_i32_0 = arith.constant 0 : i32
    return %arg1, %arg0, %c0_i32 : i32, i32, i32
  }
  func.func @transform_1(%arg0: i32, %arg1: i32) -> (i32, i32, i32) {
    %c0_i32 = arith.constant 0 : i32
    %c0_i32_0 = arith.constant 0 : i32
    return %arg1, %arg0, %c0_i32 : i32, i32, i32
  }
  func.func @transform_2(%arg0: i32, %arg1: i32) -> (i32, i32) {
    %c0_i32 = arith.constant 0 : i32
    %c0_i32_0 = arith.constant 0 : i32
    return %arg0, %c0_i32 : i32, i32
  }
  func.func @transform_3(%arg0: i32, %arg1: i32) -> (i32, i32) {
    %c0_i32 = arith.constant 0 : i32
    %c0_i32_0 = arith.constant 0 : i32
    return %arg0, %c0_i32 : i32, i32
  }
  func.func @transform_4(%arg0: i32, %arg1: i32) -> (i32, i32) {
    %c0_i32 = arith.constant 0 : i32
    %c0_i32_0 = arith.constant 0 : i32
    return %arg0, %c0_i32 : i32, i32
  }
  func.func @transform_5(%arg0: i32, %arg1: i32) -> (i32, i32) {
    %c0_i32 = arith.constant 0 : i32
    %c0_i32_0 = arith.constant 0 : i32
    %c0_i32_1 = arith.constant 0 : i32
    return %c0_i32, %c0_i32_0 : i32, i32
  }
  func.func @transform_6(%arg0: i32, %arg1: i32) -> (i32, i32) {
    %c0_i32 = arith.constant 0 : i32
    %c0_i32_0 = arith.constant 0 : i32
    %c0_i32_1 = arith.constant 0 : i32
    return %c0_i32, %c0_i32_0 : i32, i32
  }
  func.func @transform_7(%arg0: i32, %arg1: i32) -> (i32, i32) {
    %c0_i32 = arith.constant 0 : i32
    %c0_i32_0 = arith.constant 0 : i32
    %c0_i32_1 = arith.constant 0 : i32
    return %c0_i32, %c0_i32_0 : i32, i32
  }
  func.func @transform_8(%arg0: i32, %arg1: i32) -> (i32, i32) {
    %c0_i32 = arith.constant 0 : i32
    %c0_i32_0 = arith.constant 0 : i32
    %c0_i32_1 = arith.constant 0 : i32
    return %c0_i32, %c0_i32_0 : i32, i32
  }
  func.func @transform_9(%arg0: i32, %arg1: i32) -> (i32, i32) {
    %c0_i32 = arith.constant 0 : i32
    %c0_i32_0 = arith.constant 0 : i32
    %c0_i32_1 = arith.constant 0 : i32
    return %c0_i32, %c0_i32_0 : i32, i32
  }
  func.func @transform_10(%arg0: i32, %arg1: i32) -> (i32, i32) {
    %c0_i32 = arith.constant 0 : i32
    %c0_i32_0 = arith.constant 0 : i32
    %c0_i32_1 = arith.constant 0 : i32
    return %c0_i32, %c0_i32_0 : i32, i32
  }
  func.func @transform_11(%arg0: i32, %arg1: i32) -> (i32, i32) {
    %c0_i32 = arith.constant 0 : i32
    %c0_i32_0 = arith.constant 0 : i32
    %c0_i32_1 = arith.constant 0 : i32
    return %c0_i32, %c0_i32_0 : i32, i32
  }
  func.func @transform_12(%arg0: i32, %arg1: i32) -> (i32, i32) {
    %c0_i32 = arith.constant 0 : i32
    %c0_i32_0 = arith.constant 0 : i32
    %c0_i32_1 = arith.constant 0 : i32
    return %c0_i32, %c0_i32_0 : i32, i32
  }
  func.func @transform_13(%arg0: i32, %arg1: i32) -> (i32, i32) {
    %c0_i32 = arith.constant 0 : i32
    %c0_i32_0 = arith.constant 0 : i32
    %c0_i32_1 = arith.constant 0 : i32
    return %c0_i32, %c0_i32_0 : i32, i32
  }
  func.func @transform_14(%arg0: i32, %arg1: i32) -> (i32, i32) {
    %c0_i32 = arith.constant 0 : i32
    %c0_i32_0 = arith.constant 0 : i32
    %c0_i32_1 = arith.constant 0 : i32
    return %c0_i32, %c0_i32_0 : i32, i32
  }
  func.func @transform_15(%arg0: i32, %arg1: i32) -> (i32, i32) {
    %c0_i32 = arith.constant 0 : i32
    %c0_i32_0 = arith.constant 0 : i32
    %c0_i32_1 = arith.constant 0 : i32
    return %c0_i32, %c0_i32_0 : i32, i32
  }
  func.func @transform_16(%arg0: i32, %arg1: i32) -> (i32, i32) {
    %c0_i32 = arith.constant 0 : i32
    %c0_i32_0 = arith.constant 0 : i32
    %c0_i32_1 = arith.constant 0 : i32
    return %c0_i32, %c0_i32_0 : i32, i32
  }
  func.func @transform_17(%arg0: i32, %arg1: i32) -> (i32, i32) {
    %c0_i32 = arith.constant 0 : i32
    %c0_i32_0 = arith.constant 0 : i32
    %c0_i32_1 = arith.constant 0 : i32
    return %c0_i32, %c0_i32_0 : i32, i32
  }
  func.func @transform_18(%arg0: i32, %arg1: i32) -> (i32, i32) {
    %c0_i32 = arith.constant 0 : i32
    %c0_i32_0 = arith.constant 0 : i32
    %c0_i32_1 = arith.constant 0 : i32
    return %c0_i32, %c0_i32_0 : i32, i32
  }
  func.func @transform_19(%arg0: i32, %arg1: i32) -> (i32, i32) {
    %c0_i32 = arith.constant 0 : i32
    %c0_i32_0 = arith.constant 0 : i32
    %c0_i32_1 = arith.constant 0 : i32
    return %c0_i32, %c0_i32_0 : i32, i32
  }
  func.func @transform_20(%arg0: i32, %arg1: i32) -> (i32, i32) {
    %c0_i32 = arith.constant 0 : i32
    %c0_i32_0 = arith.constant 0 : i32
    %c0_i32_1 = arith.constant 0 : i32
    return %c0_i32, %c0_i32_0 : i32, i32
  }
  func.func @transform_21(%arg0: i32, %arg1: i32) -> (i32, i32) {
    %c0_i32 = arith.constant 0 : i32
    %c0_i32_0 = arith.constant 0 : i32
    %c0_i32_1 = arith.constant 0 : i32
    return %c0_i32, %c0_i32_0 : i32, i32
  }
  func.func @transform_22(%arg0: i32, %arg1: i32) -> (i32, i32) {
    %c0_i32 = arith.constant 0 : i32
    %c0_i32_0 = arith.constant 0 : i32
    %c0_i32_1 = arith.constant 0 : i32
    return %c0_i32, %c0_i32_0 : i32, i32
  }
  func.func @transform_23(%arg0: i32, %arg1: i32) -> (i32, i32) {
    %c0_i32 = arith.constant 0 : i32
    %c0_i32_0 = arith.constant 0 : i32
    %c0_i32_1 = arith.constant 0 : i32
    return %c0_i32, %c0_i32_0 : i32, i32
  }
  func.func @transform_24(%arg0: i32, %arg1: i32) -> (i32, i32, i32) {
    %c0_i32 = arith.constant 0 : i32
    %c0_i32_0 = arith.constant 0 : i32
    return %arg1, %arg0, %c0_i32 : i32, i32, i32
  }
}

</mosaic_0001>

<bundles_post_ra>
// kernel: tpu_custom_call.1
= control target key start
LH: loop header
LB: loop body
LE: loop exit
PB: predicated region body
PF: predicated region fallthrough
CT: control target
= control target key end

     0   :  { %s2961_s0 = inlined_call_operand.vmem [shape: f32[8,16,4], index: 0, kind: input, shape index: {}]   ;;  %s2962_s1 = inlined_call_operand.vmem [shape: f32[8,16,4], index: 1, kind: input, shape index: {}]   ;;  %s2963_s2 = inlined_call_operand.vmem [shape: f32[16,4], index: 2, kind: input, shape index: {}]   ;;  %s2964_s3 = inlined_call_operand.vmem [shape: f32[16,4], index: 3, kind: input, shape index: {}]   ;;  %s2965_s4 = inlined_call_operand.vmem [shape: f32[16,32], index: 4, kind: input, shape index: {}]   ;;  %s2966_s5 = inlined_call_operand.vmem [shape: f32[4,4], index: 5, kind: input, shape index: {}]   ;;  %s2967_s6 = inlined_call_operand.vmem [shape: f32[4,4], index: 6, kind: input, shape index: {}]   ;;  %s2968_s7 = inlined_call_operand.vmem [shape: f32[8,32], index: 7, kind: input, shape index: {}]   ;;  %s2969_s8 = inlined_call_operand.vmem [shape: f32[1,32], index: 8, kind: input, shape index: {}]   ;;  %s2970_s9 = inlined_call_operand.vmem [shape: f32[64,32], index: 9, kind: input, shape index: {}]   ;;  %s2971_s10 = inlined_call_operand.vmem [shape: f32[1,32], index: 10, kind: input, shape index: {}]   ;;  %s2972_s11 = inlined_call_operand.vmem [shape: f32[64,32], index: 11, kind: input, shape index: {}]   ;;  %s2973_s12 = inlined_call_operand.vmem [shape: f32[1,32], index: 12, kind: input, shape index: {}]   ;;  %s2974_s13 = inlined_call_operand.vmem [shape: f32[32,32], index: 13, kind: input, shape index: {}]   ;;  %s2975_s14 = inlined_call_operand.vmem [shape: f32[1,32], index: 14, kind: input, shape index: {}]   ;;  %s2976_s15 = inlined_call_operand.vmem [shape: f32[32,32], index: 15, kind: input, shape index: {}]   ;;  %s2977_s16 = inlined_call_operand.vmem [shape: f32[1,32], index: 16, kind: input, shape index: {}]   ;;  %s2978_s17 = inlined_call_operand.vmem [shape: f32[32,16], index: 17, kind: input, shape index: {}]   ;;  %s2979_s18 = inlined_call_operand.vmem [shape: f32[1,16], index: 18, kind: input, shape index: {}]   ;;  %s2980_s19 = inlined_call_operand.vmem [shape: f32[16,4], index: 19, kind: input, shape index: {}]   ;;  %s2981_s20 = inlined_call_operand.vmem [shape: f32[24,32], index: 20, kind: input, shape index: {}]   ;;  %s2982_s21 = inlined_call_operand.vmem [shape: f32[1,32], index: 21, kind: input, shape index: {}]   ;;  %s2983_s22 = inlined_call_operand.vmem [shape: f32[32,4], index: 22, kind: input, shape index: {}]   ;;  %s2984_s23 = inlined_call_operand.vmem [shape: f32[1,4], index: 23, kind: input, shape index: {}]   ;;  %s2985_s24 = inlined_call_operand.hbm [shape: f32[8,16,128], index: 24, kind: output, shape index: {}]  }
   0x1   :  { %3004 = sst [smem:[#allocation20_spill]] %s2961_s0 }
   0x2   :  { %3005 = sst [smem:[#allocation21_spill]] %s2962_s1 }
   0x3   :  { %3006 = sst [smem:[#allocation22_spill]] %s2963_s2 }
   0x4   :  { %3007 = sst [smem:[#allocation23_spill]] %s2964_s3 }
   0x5   :  { %3008 = sst [smem:[#allocation24_spill]] %s2965_s4 }
   0x6   :  { %3009 = sst [smem:[#allocation25_spill]] %s2966_s5 }
   0x7   :  { %3010 = sst [smem:[#allocation26_spill]] %s2967_s6 }
   0x8   :  { %3011 = sst [smem:[#allocation27_spill]] %s2968_s7 }
   0x9   :  { %3012 = sst [smem:[#allocation28_spill]] %s2969_s8 }
   0xa   :  { %3013 = sst [smem:[#allocation29_spill]] %s2975_s14 }
   0xb   :  { %3014 = sst [smem:[#allocation30_spill]] %s2977_s16 }
   0xc   :  { %3015 = sst [smem:[#allocation31_spill]] %s2979_s18 }
   0xd   :  { %3016 = sst [smem:[#allocation32_spill]] %s2980_s19 }
   0xe   :  { %3017 = sst [smem:[#allocation33_spill]] %s2981_s20 }
   0xf   :  { %3018 = sst [smem:[#allocation34_spill]] %s2982_s21 }
  0x10   :  { %3019 = sst [smem:[#allocation35_spill]] %s2983_s22 }
  0x11   :  { %3020 = sst [smem:[#allocation36_spill]] %s2984_s23 }
  0x12   :  { %3021 = sst [smem:[#allocation37_spill]] %s2985_s24 }
  0x13   :  { %29 = vsyncpa [#allocation6], 0 }
  0x14   :  { %31 = vsyncpa [#allocation6 + $0x1], 0  ;;  %s2562_s5 = smov 0   ;;  %s2564_s26 = smov 0  }
  0x15   :  { %s2566_s27 = smov 0   ;;  %s2568_s28 = smov 0  }
  0x16   :  { %s2570_s6 = smov 0   ;;  %s2572_s2 = smov 0  }
  0x17   :  { %s2574_s29 = smov 0   ;;  %s2576_s0 = smov 0  }
  0x18 LB: > { %3022 = sst [smem:[#allocation8_spill]] %s2399_s5  ;;  %s1985_s7 = sadd.s32 4294967295, %s2427_s0   ;;  %s2427_s0 = sphi %s2576_s0, %s37_s0   ;;  %s2423_s29 = sphi %s2574_s29, %s3068_s29   ;;  %s2419_s2 = sphi %s2572_s2, %s3067_s2   ;;  %s2415_s6 = sphi %s2570_s6, %s3066_s6   ;;  %s2411_s28 = sphi %s2568_s28, %s3065_s28   ;;  %s2407_s27 = sphi %s2566_s27, %s3064_s27   ;;  %s2403_s26 = sphi %s2564_s26, %s3063_s26   ;;  %s2399_s5 = sphi %s2562_s5, %s3062_s5  }
  0x19   : > { %3023 = sst [smem:[#allocation9_spill]] %s2403_s26  ;;  %s1986_s30 = sadd.s32 4294967294, %s2427_s0  }
  0x1a   : > { %3024 = sst [smem:[#allocation10_spill]] %s2407_s27  ;;  %s46_s3 = sadd.s32 1, %s2419_s2 }
  0x1b   : > { %3025 = sst [smem:[#allocation11_spill]] %s2415_s6  ;;  %p47_p0 = scmp.ge.s32.totalorder %s46_s3, 8 }
  0x1c   : > { %3026 = sst [smem:[#allocation12_spill]] %s2419_s2  ;;  %s49_s25 = sadd.s32 1, %s2423_s29 }
  0x1d   : > { %3027 = sst [smem:[#allocation13_spill]] %s2423_s29  ;;  %p601_p1 = scmp.ne.s32.totalorder %s2407_s27, %s2403_s26 }
  0x1e   : > { %3028 = sst [smem:[#allocation14_spill]] %s2427_s0  ;;  %p602_p2 = scmp.eq.s32.totalorder %s1985_s7, 15 }
  0x1f   : > { %s3070_s3 = smov (%p47_p0, %s46_s3), 0  ;;  %s3072_s25 = smov (!%p47_p0, %s49_s25), %s2423_s29 }
  0x20   : > { %3029 = sst [smem:[#allocation15_spill]] %s3070_s3  ;;  %s586_s8 = ssub.s32 %s2419_s2, %s3070_s3 }
  0x21   : > { %p2613_p3 = por %p602_p2, %p601_p1  ;;  %p51_p4 = scmp.ge.s32.totalorder %s3072_s25, 2 }
  0x22   : > { %p607_p5 = scmp.ne.s32.totalorder %s2403_s26, %s2399_s5  ;;  %p608_p6 = scmp.eq.s32.totalorder %s1986_s30, 15 }
  0x23   : > { %s3030_s4 = scalar_select %p2613_p3, 1, 0 }
  0x24   : > { %p1989_p7 = scmp.ge.s32.totalorder %s2427_s0, 1  ;;  %s3074_s25 = smov (%p51_p4, %s3072_s25), 0 }
  0x25   : > { %3031 = sst [smem:[#allocation16_spill]] %s3030_s4  ;;  %p2622_p8 = por %p608_p6, %p607_p5 }
  0x26   : > { %3032 = sst [smem:[#allocation17_spill]] %s3074_s25  ;;  %p726_p9 = scmp.lt.s32.totalorder %s2427_s0, 17 }
  0x27   : > { %s3033_s1 = scalar_select %p2622_p8, 1, 0 }
  0x28   : > { %s587_s7 = ssub.s32 %s2423_s29, %s3074_s25  ;;  %s591_s24 = sadd.s32 1, %s2407_s27 }
  0x29   : > { %3034 = sst [smem:[#allocation18_spill]] %s3033_s1  ;;  %s588_s23 = sor.u32 %s587_s7, %s586_s8 }
  0x2a   : > { %p727_p10 = pnand %p1989_p7, %p726_p9  ;;  %p589_p11 = scmp.eq.s32.totalorder %s588_s23, 0 }
  0x2b   : > { %s3000_s30 = sand.u32 (!%p727_p10), 1, %s2403_s26   ;;  %p815_p12 = scmp.lt.s32.totalorder (!%p727_p10), %s2411_s28, 7 }
  0x2c   : > { %s2631_s3 = scalar_select %p589_p11, %s2407_s27, %s591_s24  }
  0x2d   : > { %730 = sbr.rel (%p727_p10) target bundleno = 1870 (0x74e), region = 116  ;;  %s2637_s2 = sshll.u32 (!%p727_p10), %s3000_s30, 3 }
  0x2e   : > { %3035 = sst [smem:[#allocation19_spill]] %s2631_s3  ;;  %p817_p13 = scmp.lt.s32.totalorder (!%p727_p10), %s2415_s6, 1 }
  0x2f   : > { %s3036_s1 = sld [smem:[#allocation22_spill]] (!%p727_p10)  ;;  %s3037_s21 = sld [smem:[#allocation20_spill]] (!%p727_p10) }
  0x30   : > { %s3038_s18 = sld [smem:[#allocation21_spill]] (!%p727_p10)  ;;  %s3040_s14 = sld [smem:[#allocation24_spill]] (!%p727_p10) }
  0x31   : > { %s814_s27 = scalar_lea.vmem (!%p727_p10), [#allocation5], %s2637_s2  ;;  %p1998_p0 = scmp.ne.s32.totalorder (!%p727_p10), %s2411_s28, 0 }
  0x34   : > { %s816_s25 = scalar_select %p815_p12, %s2411_s28, 7 }
  0x35   : > { %s818_s8 = scalar_select %p817_p13, %s2415_s6, 1 }
  0x36   : > { %s1991_s7 = sshll.u32 %s816_s25, 1  ;;  %s3039_s25 = sld [smem:[#allocation23_spill]]  ;;  %vm848_vm0 = vcmask (!%p1998_p0), 31744   ;;  %vm853_vm1 = vcmask (!%p1998_p0), 261120  }
  0x37   : > { %s820_s23 = sadd.s32 %s1991_s7, %s818_s8  ;;  %s1995_s24 = sshll.u32 %s818_s8, 3 }
  0x38   : > { %s1992_s29 = sshll.u32 %s820_s23, 3  ;;  %s834_s5 = scalar_lea.vmem %s3036_s1, %s1995_s24 }
  0x39   : > { %s2648_s19 = scalar_lea.vmem %s3037_s21, %s1992_s29  ;;  %s2653_s22 = scalar_lea.vmem %s3038_s18, %s1992_s29  ;;  %v847_v0 = vld [vmem:[%s834_s5] sm:$0xff] (!%p1998_p0) }
  0x3a   : > { %s842_s16 = scalar_lea.vmem %s3040_s14, %s1995_s24  ;;  %846 = sbr.rel (%p1998_p0) target bundleno = 65 (0x41), region = 120  ;;  %849 = vst.msk [vmem:[#allocation2] sm:$0xff] (!%p1998_p0), %vm848_vm0, %v847_v0 }
  0x3b   : > { %v852_v2 = vld [vmem:[%s842_s16] sm:$0xff] (!%p1998_p0) }
  0x3c   : > { %s838_s7 = scalar_lea.vmem %s3039_s25, %s1995_s24  ;;  %854 = vst.msk [vmem:[#allocation4] sm:$0xff] (!%p1998_p0), %vm853_vm1, %v852_v2 }
  0x3d   : > { %v850_v1 = vld [vmem:[%s838_s7] sm:$0xff] (!%p1998_p0) }
  0x3e   : > { %851 = vst.msk [vmem:[#allocation3] sm:$0xff] (!%p1998_p0), %vm848_vm0, %v850_v1 }
  0x41 PF: > { %s3041_s21 = sld [smem:[#allocation25_spill]]  ;;  %vm864_vm2 = vcmask 1043456   ;;  %v858_v4 = vld [vmem:[#allocation2] sm:$0xff]  ;;  %v2429_v5 = vmov 0.0   ;;  %vm2430_vm3 = vmmov 0   ;;  %vm860_vm4 = vcmask 31744  }
  0x42   : > { %2078 = vmatprep.subr.mxu0 %v2429_v5  ;;  %2080 = vmatprep.mubr.msk.f32.mxu0 %vm2430_vm3, %v2429_v5  ;;  %s3042_s5 = sld [smem:[#allocation26_spill]]  ;;  %v855_v9 = vld [vmem:[%s2648_s19] sm:$0xff]  ;;  %s3043_s29 = sld [smem:[#allocation27_spill]]  ;;  %v1113_v13 = vld [vmem:[%s2970_s9 + $0x8] sm:$0xff]  ;;  %v2431_v14 = vmov 0.0|0.0   ;;  %v1114_v16 = vld [vmem:[%s2970_s9 + $0x10] sm:$0xff] }
  0x43   : > { %2083 = vmatprep.subr.mxu1 %v2429_v5  ;;  %2085 = vmatprep.mubr.msk.f32.mxu1 %vm2430_vm3, %v2429_v5  ;;  %v1112_v12 = vld [vmem:[%s2970_s9] sm:$0xff]  ;;  %v1115_v17 = vld [vmem:[%s2970_s9 + $0x18] sm:$0xff]  ;;  %v1117_v23 = vld [vmem:[%s2970_s9 + $0x28] sm:$0xff]  ;;  %s2432_s20 = smov 8   ;;  %s2434_s14 = smov 12   ;;  %vm1031_vm5 = vcmask 64512  }
  0x44   : > { %v2192_v15 = vpack.c.bf16 %v1113_v13, %v1112_v12  ;;  %v2195_v21 = vpack.c.bf16 %v1115_v17, %v1114_v16  ;;  %v1116_v22 = vld [vmem:[%s2970_s9 + $0x20] sm:$0xff]  ;;  %v2717_v24 = vld [vmem:[#allocation4] sm:$0xff]  ;;  %s2435_s16 = smov 32   ;;  %v1208_v28 = vld [vmem:[%s2972_s11 + $0x8] sm:$0xff]  ;;  %vm1110_vm6 = vcmask 261120   ;;  %vm1127_vm7 = vcmask 523264  }
  0x45   : > { %v1016_v10 = vld [vmem:[#allocation3] sm:$0xff]  ;;  %v2198_v25 = vpack.c.bf16 %v1117_v23, %v1116_v22  ;;  %v856_v26 = vld [vmem:[%s2653_s22] sm:$0xff]  ;;  %v1209_v32 = vld [vmem:[%s2972_s11 + $0x10] sm:$0xff]  ;;  %s3045_s23 = sld [smem:[#allocation30_spill]]  ;;  %s3047_s6 = sld [smem:[#allocation33_spill]]  ;;  %vm1564_vm8 = vcmask 97280  }
  0x46   : > { %1823 = vst.msk [vmem:[#allocation3] sm:$0xff] %vm860_vm4, %v855_v9  ;;  %v1207_v27 = vld [vmem:[%s2972_s11] sm:$0xff]  ;;  %v1017_v29 = vsub.f32 %v855_v9, %v1016_v10  ;;  %v1210_v33 = vld [vmem:[%s2972_s11 + $0x18] sm:$0xff]  ;;  %v1212_v37 = vld [vmem:[%s2972_s11 + $0x28] sm:$0xff]  ;;  %s3049_s30 = sld [smem:[#allocation35_spill]]  ;;  %vm1587_vm9 = vcmask 195584  }
  0x47   : > { %v859_v3 = vld [vmem:[%s3041_s21] sm:$0xf]  ;;  %s2433_s21 = smov 4   ;;  %v2204_v30 = vpack.c.bf16 %v1208_v28, %v1207_v27  ;;  %v2207_v35 = vpack.c.bf16 %v1210_v33, %v1209_v32  ;;  %v1118_v39 = vld [vmem:[%s2970_s9 + $0x30] sm:$0xff]  ;;  %v1119_v40 = vld [vmem:[%s2970_s9 + $0x38] sm:$0xff]  ;;  %vm1748_vm10 = vcmask 130048  }
  0x48   : > { %2079 = vmatpush3.msk.msra.mxu0 %vm864_vm2, %v859_v3  ;;  %v938_v6 = vld [vmem:[%s3042_s5] sm:$0xf]  ;;  %v2201_v41 = vpack.c.bf16 %v1119_v40, %v1118_v39  ;;  %v1213_v42 = vld [vmem:[%s2972_s11 + $0x30] sm:$0xff]  ;;  %v1214_v43 = vld [vmem:[%s2972_s11 + $0x38] sm:$0xff]  ;;  %s3052_s3 = sld [smem:[#allocation11_spill]]  ;;  %s3053_s19 = sld [smem:[#allocation34_spill]] }
  0x49   : > { %2081 = vmatmul.mubr.msk.f32.vlgmr.msra.gmra.mrb[0].mxu0 %vm860_vm4, %v858_v4  ;;  %2088 = vmatprep.subr.mxu0 %v2429_v5  ;;  %v1023_v11 = vld [vmem:[%s3043_s29] sm:$0xff]  ;;  %v2213_v44 = vpack.c.bf16 %v1214_v43, %v1213_v42  ;;  %s3044_s29 = sld [smem:[#allocation28_spill]]  ;;  %v1299_v48 = vld [vmem:[%s2974_s13 + $0x8] sm:$0xff]  ;;  %v1300_v56 = vld [vmem:[%s2974_s13 + $0x10] sm:$0xff]  ;;  %s2023_s24 = sshll.u32 %s2411_s28, 1  ;;  %vm1834_vm11 = vcmask 326656  }
  0x4a   : > { %2090 = vmatprep.mubr.msk.f32.mxu0 %vm2430_vm3, %v2429_v5  ;;  %2084 = vmatpush3.msk.msra.mxu1 %vm864_vm2, %v938_v6  ;;  %v1211_v36 = vld [vmem:[%s2972_s11 + $0x20] sm:$0xff]  ;;  %v1383_v52 = vld [vmem:[%s2976_s15 + $0x8] sm:$0xff]  ;;  %v1301_v57 = vld [vmem:[%s2974_s13 + $0x18] sm:$0xff]  ;;  %s3054_s8 = sld [smem:[#allocation36_spill]]  ;;  %s1853_s26 = sshll.u32 %s814_s27, 4  ;;  %s2906_s26 = int_to_ptr.vmem [resolvable:$true] %s1853_s26 }
  0x4b   : > { %2089 = vmatpush3.msra.mxu0 %v1023_v11  ;;  %2191 = vmatprep.subr.bf16.mxu1 %v2431_v14  ;;  %v2210_v38 = vpack.c.bf16 %v1212_v37, %v1211_v36  ;;  %v1298_v47 = vld [vmem:[%s2974_s13] sm:$0xff]  ;;  %v1384_v60 = vld [vmem:[%s2976_s15 + $0x10] sm:$0xff]  ;;  %v1385_v61 = vld [vmem:[%s2976_s15 + $0x18] sm:$0xff]  ;;  %v2219_v62 = vpack.c.bf16 %v1301_v57, %v1300_v56  ;;  %s3048_s22 = smov %s3047_s6  ;;  %s2436_s4 = smov [#allocation5]  }
  0x4c   : > { %2203 = vmatprep.subr.bf16.mxu0 %v2431_v14  ;;  %v1382_v51 = vld [vmem:[%s2976_s15] sm:$0xff]  ;;  %v2216_v54 = vpack.c.bf16 %v1299_v48, %v1298_v47  ;;  %v2225_v63 = vpack.c.bf16 %v1385_v61, %v1384_v60  ;;  %v1473_v1 = vld [vmem:[%s2978_s17 + $0x8] sm:$0xff]  ;;  %v1474_v2 = vld [vmem:[%s2978_s17 + $0x10] sm:$0xff]  ;;  %s2337_s1 = sshll.u32 %s2436_s4, 4  ;;  %s2338_s1 = int_to_ptr.vmem [resolvable:$false] %s2337_s1 }
  0x4d   : > { %v2222_v58 = vpack.c.bf16 %v1383_v52, %v1382_v51  ;;  %v1472_v0 = vld [vmem:[%s2978_s17] sm:$0xff]  ;;  %v1475_v4 = vld [vmem:[%s2978_s17 + $0x18] sm:$0xff]  ;;  %v1663_v48 = vld [vmem:[%s3049_s30 + $0x8] sm:$0xff]  ;;  %p2340_p5 = scmp.lt.s32.totalorder %s2906_s26, %s2338_s1 }
  0x4e   : > { %v2228_v3 = vpack.c.bf16 %v1473_v1, %v1472_v0  ;;  %v2231_v6 = vpack.c.bf16 %v1475_v4, %v1474_v2  ;;  %v2008_v12 = vld [vmem:[%s2973_s12] ss:$0 sm:$0xff]  ;;  %v1665_v0 = vld [vmem:[%s3049_s30 + $0x18] sm:$0xff]  ;;  %s1849_s18 = sadd.s32 %s3052_s3, %s2023_s24  ;;  %s2333_s3 = scalar_lea.vmem %s2906_s26, 128 }
  0x4f   : > { %v2003_v45 = vld [vmem:[%s3044_s29] ss:$0 sm:$0xff]  ;;  %s2024_s5 = sshll.u32 %s1849_s18, 7  ;;  %p2334_p1 = scmp.ne.s32.totalorder %s2906_s26, %s2333_s3 }
  0x50   : > { %v2013_v28 = vld [vmem:[%s3045_s23] ss:$0 sm:$0xff]  ;;  %s3050_s23 = sld [smem:[#allocation31_spill]] }
  0x51   : > { %v1577_v43 = vld [vmem:[%s3047_s6] sm:$0xff]  ;;  %p2335_p2 = pnand %p2334_p1, %p2613_p3 }
  0x52   : > { %v1662_v47 = vld [vmem:[%s3049_s30] sm:$0xff] }
  0x53   : > { %v2237_v51 = vpack.c.bf16 %v1663_v48, %v1662_v47  ;;  %v2017_v2 = vld [vmem:[%s3053_s19] ss:$0 sm:$0xff]  ;;  %p2336_p4 = pneg %p2335_p2  ;;  %s2339_s19 = scalar_lea.vmem %s2338_s1, 256 }
  0x54   : > { %p2341_p6 = scmp.lt.s32.totalorder %s2339_s19, %s2333_s3 }
  0x56   : > { %p2342_p7 = por %p2341_p6, %p2340_p5 }
  0x58   : > { %p2343_p9 = pnand %p2342_p7, %p2336_p4 }
 0x11c   : > { %v2679_v7 = vpop.f32.mrb[0].mxu0 }
 0x11d   : > { %v2082_v8 = vpop.f32.mrb[1].mxu0  ;;  %2086 = vmatmul.mubr.msk.f32.vlgmr.msra.gmra.mrb[0].mxu1 %vm860_vm4, %v2679_v7 }
 0x11e   : > { %2109 = vmatprep.mubr.msk.f32.mxu1 %vm2430_vm3, %v2429_v5  ;;  %2193 = vmatpush3.bf16.msra.mxu1 %v2192_v15  ;;  %v2005_v8 = vld [vmem:[%s2971_s10] ss:$0 sm:$0xff] }
 0x11f   : > { %2194 = vmatprep.subr.bf16.mxu1 %v2431_v14 }
 0x122   : > { %2196 = vmatpush3.bf16.msra.mxu1 %v2195_v21 }
 0x123   : > { %2197 = vmatprep.subr.bf16.mxu1 %v2431_v14 }
 0x126   : > { %2199 = vmatpush3.bf16.msra.mxu1 %v2198_v25 }
 0x127   : > { %2200 = vmatprep.subr.bf16.mxu1 %v2431_v14 }
 0x12a   : > { %2202 = vmatpush3.bf16.msra.mxu1 %v2201_v41 }
 0x12b   : > { %2215 = vmatprep.subr.bf16.mxu1 %v2431_v14 }
 0x1f0   : > { %v1011_v18 = vpop.f32.mrb[0].mxu1 }
 0x1f1   : > { %v2704_v19 = vsub.f32 %v855_v9, %v1011_v18  ;;  %v2087_v20 = vpop.f32.mrb[1].mxu1 }
 0x1f3   : > { %1556 = vrot.lane.b32.xlu1 %v2704_v19, %s2432_s20  ;;  %1019 = vrot.lane.b32.xlu0 %v2704_v19, %s2433_s21 }
 0x1f7   : > { %1559 = vrot.lane.b32.xlu1 %v2704_v19, %s2434_s14  ;;  %1107 = vrot.lane.b32.xlu0 %v2717_v24, %s2435_s16  ;;  %s3046_s16 = sld [smem:[#allocation29_spill]] }
 0x1fb   : > { %1568 = vrot.lane.b32.xlu0 %v856_v26, %s2433_s21 }
 0x1fd   : > { %v2011_v32 = vld [vmem:[%s3046_s16] ss:$0 sm:$0xff]  ;;  %s3051_s16 = sld [smem:[#allocation32_spill]] }
 0x265   : > { %v2731_v31 = vpop.permute.xlu0 %1019 }
 0x266   : > { %v1022_v34 = vsel %vm860_vm4, %v1017_v29, %v2731_v31 }
 0x267   : > { %2091 = vmatmul.mubr.msk.f32.vlgmr.msra.gmra.mrb[2].mxu0 %vm1031_vm5, %v1022_v34 }
 0x268   : > { %2205 = vmatpush3.bf16.msra.mxu0 %v2204_v30  ;;  %2128 = vmatprep.mubr.msk.f32.mxu0 %vm2430_vm3, %v2429_v5 }
 0x269   : > { %2206 = vmatprep.subr.bf16.mxu0 %v2431_v14  ;;  %v1108_v55 = vpop.permute.xlu0 %1107 }
 0x26c   : > { %2208 = vmatpush3.bf16.msra.mxu0 %v2207_v35 }
 0x26d   : > { %2209 = vmatprep.subr.bf16.mxu0 %v2431_v14 }
 0x270   : > { %2211 = vmatpush3.bf16.msra.mxu0 %v2210_v38 }
 0x271   : > { %2212 = vmatprep.subr.bf16.mxu0 %v2431_v14 }
 0x274   : > { %2214 = vmatpush3.bf16.msra.mxu0 %v2213_v44  ;;  %v1578_v44 = vld [vmem:[%s3048_s22 + $0x8] sm:$0xff] }
 0x275   : > { %2221 = vmatprep.subr.bf16.mxu0 %v2431_v14 }
 0x33a   : > { %v1101_v46 = vpop.f32.mrb[2].mxu0 }
 0x33b   : > { %v1102_v49 = vadd.f32 %v2003_v45, %v1101_v46  ;;  %v2092_v50 = vpop.f32.mrb[3].mxu0  ;;  %v2234_v45 = vpack.c.bf16 %v1578_v44, %v1577_v43  ;;  %v1557_v46 = vpop.permute.xlu1 %1556 }
 0x33c   : > { %v2015_v50 = vld [vmem:[%s3050_s23] ss:$0 sm:$0xff]  ;;  %s3055_s23 = sld [smem:[#allocation9_spill]] }
 0x33d   : > { %v1105_v53 = vmax.f32 %v1102_v49, 0.0  ;;  %v1562_v49 = vsel %vm860_vm4, %v2704_v19, %v2731_v31  ;;  %v1746_v19 = vld [vmem:[%s3051_s16] sm:$0xff]  ;;  %v1747_v31 = vld [vmem:[%s3051_s16 + $0x8] sm:$0xff] }
 0x33e   : > { %v2243_v60 = vpack.c.bf16 %v1747_v31, %v1746_v19 }
 0x33f   : > { %v1111_v59 = vsel %vm1110_vm6, %v1105_v53, %v1108_v55  ;;  %v1560_v52 = vpop.permute.xlu1 %1559 }
 0x340   : > { %2110 = vmatmul.mubr.msk.f32.vlgmr.msra.gmra.mrb[2].mxu1 %vm1127_vm7, %v1111_v59  ;;  %2129 = vmatmul.mubr.msk.f32.vlgmr.msra.gmra.mrb[4].mxu0 %vm1127_vm7, %v1111_v59  ;;  %v1569_v59 = vpop.permute.xlu0 %1568 }
 0x341   : > { %2217 = vmatpush3.bf16.msra.mxu1 %v2216_v54  ;;  %2139 = vmatprep.mubr.msk.f32.mxu1 %vm2430_vm3, %v2429_v5  ;;  %v1563_v54 = vsel %vm1031_vm5, %v1562_v49, %v1557_v46 }
 0x342   : > { %2218 = vmatprep.subr.bf16.mxu1 %v2431_v14  ;;  %2223 = vmatpush3.bf16.msra.mxu0 %v2222_v58  ;;  %v1565_v57 = vsel %vm1564_vm8, %v1563_v54, %v1560_v52  ;;  %s3058_s29 = sand.u32 1, %s3055_s23  }
 0x343   : > { %2224 = vmatprep.subr.bf16.mxu0 %v2431_v14  ;;  %2150 = vmatprep.mubr.msk.f32.mxu0 %vm2430_vm3, %v2429_v5  ;;  %s1838_s0 = scalar_lea.sflag [#allocation6], %s3058_s29 }
 0x345   : > { %2220 = vmatpush3.bf16.msra.mxu1 %v2219_v62 }
 0x346   : > { %2226 = vmatpush3.bf16.msra.mxu0 %v2225_v63  ;;  %2227 = vmatprep.subr.bf16.mxu1 %v2431_v14  ;;  %v1664_v63 = vld [vmem:[%s3049_s30 + $0x10] sm:$0xff] }
 0x347   : > { %2233 = vmatprep.subr.bf16.mxu0 %v2431_v14  ;;  %v2240_v1 = vpack.c.bf16 %v1665_v0, %v1664_v63 }
 0x348   : > { %2140 = vmatmul.mubr.msk.f32.vlgmr.msra.gmra.mrb[4].mxu1 %vm1110_vm6, %v1105_v53 }
 0x349   : > { %2151 = vmatmul.mubr.msk.f32.vlgmr.msra.gmra.mrb[6].mxu0 %vm1110_vm6, %v2717_v24  ;;  %2161 = vmatprep.mubr.msk.f32.mxu1 %vm2430_vm3, %v2429_v5 }
 0x34a   : > { %2170 = vmatprep.mubr.msk.f32.mxu0 %vm2430_vm3, %v2429_v5  ;;  %2229 = vmatpush3.bf16.msra.mxu1 %v2228_v3 }
 0x34b   : > { %2230 = vmatprep.subr.bf16.mxu1 %v2431_v14  ;;  %2235 = vmatpush3.bf16.msra.mxu0 %v2234_v45 }
 0x34c   : > { %2168 = vmatprep.subr.mxu0 %v2429_v5 }
 0x34e   : > { %2232 = vmatpush3.bf16.msra.mxu1 %v2231_v6 }
 0x34f   : > { %2236 = vmatprep.subr.bf16.mxu1 %v2431_v14 }
 0x413   : > { %v1197_v9 = vpop.f32.mrb[2].mxu1  ;;  %v1288_v10 = vpop.f32.mrb[4].mxu0 }
 0x414   : > { %v1198_v11 = vadd.f32 %v2005_v8, %v1197_v9  ;;  %v2111_v13 = vpop.f32.mrb[3].mxu1  ;;  %v2130_v15 = vpop.f32.mrb[5].mxu0  ;;  %v1289_v17 = vadd.f32 %v2008_v12, %v1288_v10 }
 0x416   : > { %v2007_v16 = vmul.f32 -1.442695, %v1198_v11  ;;  %v2010_v18 = vmul.f32 -1.442695, %v1289_v17  ;;  %v2019_v11 = vld [vmem:[%s3054_s8] ss:$0 sm:$0xff] }
 0x418   : > { %2323 = vpow2.f32 %v2007_v16 }
 0x419   : > { %2325 = vpow2.f32 %v2010_v18 }
 0x41b   : > { %v1378_v20 = vpop.f32.mrb[4].mxu1 }
 0x41c   : > { %v2141_v21 = vpop.f32.mrb[5].mxu1  ;;  %v1461_v22 = vpop.f32.mrb[6].mxu0  ;;  %v1379_v34 = vadd.f32 %v2011_v32, %v1378_v20 }
 0x41d   : > { %v2152_v23 = vpop.f32.mrb[7].mxu0  ;;  %v1462_v30 = vadd.f32 %v2013_v28, %v1461_v22 }
 0x422   : > { %v2324_v25 = vpop.eup %2323 }
 0x423   : > { %v1204_v26 = vadd.f32 1.0, %v2324_v25  ;;  %v2326_v27 = vpop.eup %2325 }
 0x424   : > { %v1295_v29 = vadd.f32 1.0, %v2326_v27 }
 0x425   : > { %2327 = vrcp.f32 %v1204_v26 }
 0x426   : > { %2329 = vrcp.f32 %v1295_v29 }
 0x42f   : > { %v2328_v33 = vpop.eup %2327 }
 0x430   : > { %v1465_v35 = vmul.f32 %v2328_v33, %v1462_v30  ;;  %v2330_v37 = vpop.eup %2329 }
 0x431   : > { %v1468_v38 = vsub.f32 1.0, %v2330_v37  ;;  %v1470_v41 = vmul.f32 %v2330_v37, %v2717_v24  ;;  %v1579_v24 = vld [vmem:[%s3048_s22 + $0x10] sm:$0xff] }
 0x432   : > { %v1466_v36 = vadd.f32 %v1465_v35, %v1379_v34  ;;  %2169 = vmatpush3.msra.mxu0 %v1579_v24 }
 0x433   : > { %2242 = vmatprep.subr.bf16.mxu0 %v2431_v14 }
 0x434   : > { %2331 = vtanh.f32 %v1466_v36 }
 0x43e   : > { %v2332_v39 = vpop.eup %2331 }
 0x43f   : > { %v1469_v40 = vmul.f32 %v2332_v39, %v1468_v38 }
 0x441   : > { %v1471_v42 = vadd.f32 %v1470_v41, %v1469_v40 }
 0x443   : > { %2162 = vmatmul.mubr.msk.f32.vlgmr.msra.gmra.mrb[6].mxu1 %vm1110_vm6, %v1471_v42  ;;  %1824 = vst.msk [vmem:[#allocation4] sm:$0xff] %vm1110_vm6, %v1471_v42 }
 0x444   : > { %2181 = vmatprep.mubr.msk.f32.mxu1 %vm2430_vm3, %v2429_v5  ;;  %2238 = vmatpush3.bf16.msra.mxu1 %v2237_v51 }
 0x445   : > { %2239 = vmatprep.subr.bf16.mxu1 %v2431_v14  ;;  %v1575_v14 = vsel %vm860_vm4, %v2679_v7, %v1569_v59 }
 0x448   : > { %2241 = vmatpush3.bf16.msra.mxu1 %v2240_v1 }
 0x516   : > { %v1552_v53 = vpop.f32.mrb[6].mxu1 }
 0x517   : > { %v1553_v55 = vadd.f32 %v2015_v50, %v1552_v53  ;;  %v2163_v56 = vpop.f32.mrb[7].mxu1 }
 0x519   : > { %v1566_v58 = vmul.f32 %v1565_v57, %v1553_v55 }
 0x51b   : > { %1572 = vrot.lane.b32.xlu1 %v1566_v58, %s2432_s20 }
 0x51f   : > { %1829 = vrot.lane.b32.xlu1 %v1471_v42, %s2432_s20  ;;  %s3057_s20 = sld [smem:[#allocation37_spill]] }
 0x525   : > { %s2904_s6 = scalar_lea.hbm %s3057_s20, %s2024_s5 }
 0x58d   : > { %v1573_v61 = vpop.permute.xlu1 %1572 }
 0x58e   : > { %v1576_v62 = vsel %vm1031_vm5, %v1575_v14, %v1573_v61 }
 0x58f   : > { %2171 = vmatmul.mubr.msk.f32.vlgmr.msra.gmra.mrb[8].mxu0 %vm1587_vm9, %v1576_v62 }
 0x590   : > { %2244 = vmatpush3.bf16.msra.mxu0 %v2243_v60  ;;  %2188 = vmatprep.mubr.msk.f32.mxu0 %vm2430_vm3, %v2429_v5 }
 0x591   : > { %v1830_v16 = vpop.permute.xlu1 %1829 }
 0x593   : > { %2189 = vmatmul.mubr.msk.f32.vlgmr.msra.gmra.mrb[10].mxu0 %vm1748_vm10, %v1566_v58 }
 0x662   : > { %v1657_v3 = vpop.f32.mrb[8].mxu0 }
 0x663   : > { %v1658_v5 = vadd.f32 %v2017_v2, %v1657_v3  ;;  %v2172_v4 = vpop.f32.mrb[9].mxu0 }
 0x665   : > { %v1661_v6 = vmax.f32 %v1658_v5, 0.0 }
 0x666   : > { %v1817_v8 = vpop.f32.mrb[10].mxu0 }
 0x667   : > { %v1821_v9 = vadd.f32 %v1817_v8, %v2679_v7  ;;  %2182 = vmatmul.mubr.msk.f32.vlgmr.msra.gmra.mrb[8].mxu1 %vm1110_vm6, %v1661_v6  ;;  %v2190_v10 = vpop.f32.mrb[11].mxu0 }
 0x669   : > { %1822 = vst.msk [vmem:[#allocation2] sm:$0xff] %vm860_vm4, %v1821_v9  ;;  %1826 = vrot.lane.b32.xlu0 %v1821_v9, %s2433_s21 }
 0x6db   : > { %v1827_v7 = vpop.permute.xlu0 %1826 }
 0x73a   : > { %v1742_v12 = vpop.f32.mrb[8].mxu1 }
 0x73b   : > { %v1743_v13 = vadd.f32 %v2019_v11, %v1742_v12  ;;  %v2183_v15 = vpop.f32.mrb[9].mxu1 }
 0x73d   : > { %v1832_v17 = vsel %vm860_vm4, %v1743_v13, %v1827_v7 }
 0x73e   : > { %v1833_v18 = vsel %vm1031_vm5, %v1832_v17, %v1830_v16 }
 0x73f   : > { %v1835_v20 = vsel %vm1834_vm11, %v1833_v18, 0.0 }
 0x740   : > { %1836 = vst [vmem:[%s814_s27] sm:$0xff] %v1835_v20 }
 0x741   : > { %2346 = shalt.err (!%p2343_p9)
}
 0x742   : > { %s2347_s2 = scalar_lea.hbm %s2904_s6, 128  ;;  %s2351_s25 = scalar_lea.hbm %s3057_s20, 2048 }
 0x743   : > { %p2348_p10 = scmp.ne.s32.totalorder %s2904_s6, %s2347_s2  ;;  %p2352_p13 = scmp.lt.u32.totalorder %s2904_s6, %s3057_s20 }
 0x744   : > { %p2353_p0 = scmp.lt.u32.totalorder %s2351_s25, %s2347_s2  ;;  %p2355_p2 = scmp.lt.u32.totalorder %s2347_s2, %s2904_s6 }
 0x745   : > { %p2349_p11 = pnand %p2348_p10, %p2613_p3 }
 0x746   : > { %p2354_p1 = por %p2353_p0, %p2352_p13 }
 0x747   : > { %p2350_p12 = pneg %p2349_p11 }
 0x748   : > { %p2356_p4 = por %p2355_p2, %p2354_p1 }
 0x74a   : > { %p2357_p5 = pnand %p2356_p4, %p2350_p12 }
 0x74c   : > { %2360 = shalt.err (!%p2357_p5)
}
 0x74d   : > { %2245 = dma.vmem_to_hbm [thread:$0]  (%p2613_p3), %s2906_s26, 128, %s2904_s6, %s1838_s0  }
 0x74e PF: > { %s3059_s23 = sld [smem:[#allocation14_spill]]  ;;  %s3060_s18 = sld [smem:[#allocation8_spill]] }
 0x754   : > { %p2251_p6 = scmp.ge.s32.totalorder %s3059_s23, 2  ;;  %s1865_s28 = sand.u32 1, %s3060_s18  }
 0x755   : > { %s1866_s21 = scalar_lea.sflag [#allocation6], %s1865_s28 }
 0x756   : > { %p2248_p7 = pnand %p2251_p6, %p2622_p8 }
 0x758   : > { %2394 = dma.done.wait (!%p2248_p7), %s1866_s21, 128  }
 0x759   : > { %2396 = vsyncadd (!%p2248_p7), %s1866_s21, 4294967168  ;;  %s37_s0 = sadd.s32 1, %s3059_s23   ;;  %s3062_s5 = sld [smem:[#allocation9_spill]] }
 0x75a   : > { %p34_p9 = scmp.ge.s32.totalorder %s37_s0, 18   ;;  %s3063_s26 = sld [smem:[#allocation10_spill]] }
 0x75b   : > { %s3064_s27 = sld [smem:[#allocation19_spill]]  ;;  %s3065_s28 = sld [smem:[#allocation12_spill]] }
 0x75c   : > { %s3066_s6 = sld [smem:[#allocation13_spill]]  ;;  %s3067_s2 = sld [smem:[#allocation15_spill]] }
 0x75d   : > { %s3068_s29 = sld [smem:[#allocation17_spill]]  ;;  %36 = sbr.rel (!%p34_p9) target bundleno = 24 (0x18), region = 167 }
 0x764   :  { %1871 = vsyncpa [#allocation6], 1 }
 0x765   :  { %1873 = vsyncpa [#allocation6 + $0x1], 1 }

</bundles_post_ra>
